<compile_context>
chip_gen: v7x
topology: tpu7x:2x2x1
jax: 0.10.0
libtpu: 0.0.40
codegen_flags: <defaults>
</compile_context>

<pallas_src>
import functools

import jax
import jax.numpy as jnp
import numpy as np
from jax.experimental import pallas as pl
from jax.experimental.pallas import tpu as pltpu

# ---------------- problem sizes (small, consistent with the module) -------------
N_INPUT = 2      # e.g. time + forcing for an MDOF PINN
N_OUTPUT = 4     # e.g. displacements of a small MDOF system
N_HIDDEN = 32
N_LAYERS = 3     # 1 input layer + (N_LAYERS-1) hidden layers + output layer
BATCH = 8

TILE_B_MAX = 512  # lane-dense batch tile (multiple of 128); f32 sweet spot.


# ---------------- Pallas kernel -------------------------------------------------
def mlp_kernel(x_ref, w_in_ref, b_in_ref, w_hid_ref, b_hid_ref,
               w_out_ref, b_out_ref, o_ref, *, act_dtype):
    """Transposed MLP: activations are (features, TILE_B); batch on the lane axis."""

    def act(z):
        # tanh runs on the EUP (the bound unit). With act_dtype=bf16 on
        # v6e/v7x, two elements pack per 32-bit lane -> ~2x tanh throughput.
        return jnp.tanh(z.astype(act_dtype))

    # Input layer: (H, N_IN) @ (N_IN, T) + (H, 1)   [bias lane-broadcasts]
    h = act(jnp.dot(w_in_ref[...], x_ref[...],
                    preferred_element_type=jnp.float32) + b_in_ref[...])

    # Hidden layers: static unroll over stacked (L-1, H, H) weights.
    for l in range(w_hid_ref.shape[0]):
        h = act(jnp.dot(w_hid_ref[l], h,
                        preferred_element_type=jnp.float32) + b_hid_ref[l])

    # Output layer (no activation): (N_OUT, H) @ (H, T) + (N_OUT, 1)
    o_ref[...] = (jnp.dot(w_out_ref[...], h,
                          preferred_element_type=jnp.float32)
                  + b_out_ref[...]).astype(o_ref.dtype)


@functools.partial(jax.jit, static_argnames=("tile_b", "act_dtype"))
def _bbnn_forward_impl(x, w_in, b_in, w_hid, b_hid, w_out, b_out,
                       *, tile_b, act_dtype):
    batch, n_in = x.shape
    n_hidden = w_in.shape[0]
    n_out = w_out.shape[0]
    n_hid_layers = w_hid.shape[0]

    num_tiles = pl.cdiv(batch, tile_b)       # python ints (shapes are static)
    b_pad = num_tiles * tile_b

    # Batch on the lane (last) axis; single pad fusion (no zeros + scatter).
    x_t = jnp.pad(x.T.astype(jnp.float32), ((0, 0), (0, b_pad - batch)))

    const2 = lambda i: (0, 0)
    const3 = lambda i: (0, 0, 0)

    kernel = functools.partial(mlp_kernel, act_dtype=act_dtype)

    out_t = pl.pallas_call(
        kernel,
        out_shape=jax.ShapeDtypeStruct((n_out, b_pad), jnp.float32),
        grid_spec=pltpu.PrefetchScalarGridSpec(
            num_scalar_prefetch=0,
            grid=(num_tiles,),
            in_specs=[
                pl.BlockSpec((n_in, tile_b), lambda i: (0, i)),  # streamed x tile
                # Resident params: constant index_maps -> fetched once, stay in VMEM.
                pl.BlockSpec((n_hidden, n_in), const2),
                pl.BlockSpec((n_hidden, 1), const2),             # bias column (H, 1)
                pl.BlockSpec((n_hid_layers, n_hidden, n_hidden), const3),
                pl.BlockSpec((n_hid_layers, n_hidden, 1), const3),
                pl.BlockSpec((n_out, n_hidden), const2),
                pl.BlockSpec((n_out, 1), const2),
            ],
            out_specs=pl.BlockSpec((n_out, tile_b), lambda i: (0, i)),
        ),
        compiler_params=pltpu.CompilerParams(
            dimension_semantics=("parallel",),        # megacore sharding on v7x
            vmem_limit_bytes=32 * 1024 * 1024,        # footprint is <1 MiB anyway
        ),
    )(x_t, w_in, b_in, w_hid, b_hid, w_out, b_out)

    return out_t[:, :batch].T


def _pick_tile_b(batch):
    """Lane-dense tile: multiple of 128, divides the 128-rounded batch (bounded
    pad waste), and gives >=2 grid steps when batch > 128 (v7x megacore)."""
    b128 = 128 * pl.cdiv(batch, 128)
    n128 = b128 // 128
    tile = 128 * max(1, pl.cdiv(n128, 2))     # ~half the rounded batch
    tile = min(tile, TILE_B_MAX)
    while b128 % tile != 0:                   # keep pad bounded to the 128-rounding
        tile -= 128
    return int(tile)


def _tanh_dtype_for_backend():
    """bf16 tanh only on chips with a bf16 EUP/VPU (v6e, v7x, newer)."""
    try:
        dev = jax.devices()[0]
    except Exception:
        return jnp.float32
    if dev.platform != "tpu":
        return jnp.float32
    kind = dev.device_kind.lower()
    for old_gen in ("v2", "v3", "v4", "v5"):  # no bf16 EUP/VPU on these
        if old_gen in kind:
            return jnp.float32
    return jnp.bfloat16


def bbnn_forward(x, w_in, b_in, w_hid, b_hid, w_out, b_out, act_dtype=None):
    if act_dtype is None:
        act_dtype = _tanh_dtype_for_backend()
    tile_b = _pick_tile_b(x.shape[0])
    return _bbnn_forward_impl(x, w_in, b_in, w_hid, b_hid, w_out, b_out,
                              tile_b=tile_b, act_dtype=act_dtype)


# ---------------- deterministic parameter init (PyTorch-Linear-style) -----------
def init_linear(key, fan_in, fan_out):
    # nn.Linear default: U(-1/sqrt(fan_in), 1/sqrt(fan_in)) for weight and bias.
    # Weights kept in PyTorch layout (out_features, in_features); bias as column.
    kw, kb = jax.random.split(key)
    bound = 1.0 / np.sqrt(fan_in)
    w = jax.random.uniform(kw, (fan_out, fan_in), jnp.float32, -bound, bound)
    b = jax.random.uniform(kb, (fan_out, 1), jnp.float32, -bound, bound)
    return w, b


def init_params(key):
    keys = jax.random.split(key, N_LAYERS + 1)
    w_in, b_in = init_linear(keys[0], N_INPUT, N_HIDDEN)
    w_hid_list, b_hid_list = [], []
    for l in range(N_LAYERS - 1):
        w, b = init_linear(keys[1 + l], N_HIDDEN, N_HIDDEN)
        w_hid_list.append(w)
        b_hid_list.append(b)
    w_hid = jnp.stack(w_hid_list, axis=0)          # (L-1, H, H)
    b_hid = jnp.stack(b_hid_list, axis=0)          # (L-1, H, 1)
    w_out, b_out = init_linear(keys[-1], N_HIDDEN, N_OUTPUT)
    return w_in, b_in, w_hid, b_hid, w_out, b_out


# ---------------- float64 numpy reference for verification ----------------------
def bbnn_reference(x, w_in, b_in, w_hid, b_hid, w_out, b_out):
    x = np.asarray(x, np.float64)
    h = np.tanh(x @ np.asarray(w_in, np.float64).T + np.asarray(b_in, np.float64).T)
    for l in range(w_hid.shape[0]):
        h = np.tanh(h @ np.asarray(w_hid[l], np.float64).T
                    + np.asarray(b_hid[l], np.float64).T)
    return h @ np.asarray(w_out, np.float64).T + np.asarray(b_out, np.float64).T


if __name__ == "__main__":
    key = jax.random.PRNGKey(0)
    kx, kp = jax.random.split(key)
    x = jax.random.normal(kx, (BATCH, N_INPUT), jnp.float32)
    params = init_params(kp)

    y_ref = bbnn_reference(np.asarray(x), *[np.asarray(p) for p in params])

    # 1) Full-precision path (all chips): tight check against the f64 reference.
    y32 = bbnn_forward(x, *params, act_dtype=jnp.float32)
    jax.block_until_ready(y32)
    assert y32.shape == (BATCH, N_OUTPUT)
    np.testing.assert_allclose(np.asarray(y32), y_ref, rtol=1e-4, atol=1e-4)

    # 2) Default path (bf16 tanh on v6e/v7x, f32 elsewhere): tolerance adapted.
    act_dtype = _tanh_dtype_for_backend()
    y = bbnn_forward(x, *params)
    jax.block_until_ready(y)
    assert y.shape == (BATCH, N_OUTPUT)
    tol = 1e-4 if act_dtype == jnp.float32 else 5e-2
    np.testing.assert_allclose(np.asarray(y), y_ref, rtol=tol, atol=tol)

    print("KERNEL_OK")
</pallas_src>

<mosaic_0001>
module attributes {stable_mosaic.version = 11 : i64} {
  func.func @mlp_kernel(%arg0: i32, %arg1: memref<2x128xf32, #tpu.memory_space<vmem>>, %arg2: memref<32x2xf32, #tpu.memory_space<vmem>>, %arg3: memref<32x1xf32, #tpu.memory_space<vmem>>, %arg4: memref<2x32x32xf32, #tpu.memory_space<vmem>>, %arg5: memref<2x32x1xf32, #tpu.memory_space<vmem>>, %arg6: memref<4x32xf32, #tpu.memory_space<vmem>>, %arg7: memref<4x1xf32, #tpu.memory_space<vmem>>, %arg8: memref<4x128xf32, #tpu.memory_space<vmem>>) attributes {dimension_semantics = [#tpu.dimension_semantics<parallel>], iteration_bounds = array<i64: 1>, scalar_prefetch = 0 : i64, scratch_operands = 0 : i64, tpu.core_type = #tpu.core_type<tc>, window_params = [{transform_indices = @transform_0, window_bounds = array<i64: 2, 128>}, {pipeline_mode = #tpu.pipeline_mode<synchronous>, transform_indices = @transform_1, window_bounds = array<i64: 32, 2>}, {pipeline_mode = #tpu.pipeline_mode<synchronous>, transform_indices = @transform_2, window_bounds = array<i64: 32, 1>}, {pipeline_mode = #tpu.pipeline_mode<synchronous>, transform_indices = @transform_3, window_bounds = array<i64: 2, 32, 32>}, {pipeline_mode = #tpu.pipeline_mode<synchronous>, transform_indices = @transform_4, window_bounds = array<i64: 2, 32, 1>}, {pipeline_mode = #tpu.pipeline_mode<synchronous>, transform_indices = @transform_5, window_bounds = array<i64: 4, 32>}, {pipeline_mode = #tpu.pipeline_mode<synchronous>, transform_indices = @transform_6, window_bounds = array<i64: 4, 1>}, {transform_indices = @transform_7, window_bounds = array<i64: 4, 128>}]} {
    %c0 = arith.constant 0 : index
    %c0_0 = arith.constant 0 : index
    %0 = vector.load %arg2[%c0, %c0_0] : memref<32x2xf32, #tpu.memory_space<vmem>>, vector<32x2xf32>
    %c0_1 = arith.constant 0 : index
    %c0_2 = arith.constant 0 : index
    %1 = vector.load %arg1[%c0_1, %c0_2] : memref<2x128xf32, #tpu.memory_space<vmem>>, vector<2x128xf32>
    %cst = arith.constant dense<0.000000e+00> : vector<32x128xf32>
    %2 = tpu.matmul %0, %1, %cst {dimension_numbers = #tpu.dot_dimension_numbers<[1], [0], [0], [1], [0, 0, 1, 1], [], []>} : vector<32x2xf32>, vector<2x128xf32>, vector<32x128xf32> -> vector<32x128xf32>
    %c0_3 = arith.constant 0 : index
    %c0_4 = arith.constant 0 : index
    %3 = vector.load %arg3[%c0_3, %c0_4] : memref<32x1xf32, #tpu.memory_space<vmem>>, vector<32x1xf32>
    %4 = vector.broadcast %3 : vector<32x1xf32> to vector<32x128xf32>
    %5 = arith.addf %2, %4 : vector<32x128xf32>
    %6 = math.tanh %5 : vector<32x128xf32>
    %c0_5 = arith.constant 0 : index
    %c0_6 = arith.constant 0 : index
    %c0_7 = arith.constant 0 : index
    %7 = vector.load %arg4[%c0_5, %c0_6, %c0_7] : memref<2x32x32xf32, #tpu.memory_space<vmem>>, vector<1x32x32xf32>
    %8 = vector.shape_cast %7 : vector<1x32x32xf32> to vector<32x32xf32>
    %cst_8 = arith.constant dense<0.000000e+00> : vector<32x128xf32>
    %9 = tpu.matmul %8, %6, %cst_8 {dimension_numbers = #tpu.dot_dimension_numbers<[1], [0], [0], [1], [0, 0, 1, 1], [], []>} : vector<32x32xf32>, vector<32x128xf32>, vector<32x128xf32> -> vector<32x128xf32>
    %c0_9 = arith.constant 0 : index
    %c0_10 = arith.constant 0 : index
    %c0_11 = arith.constant 0 : index
    %10 = vector.load %arg5[%c0_9, %c0_10, %c0_11] : memref<2x32x1xf32, #tpu.memory_space<vmem>>, vector<1x32x1xf32>
    %11 = vector.shape_cast %10 : vector<1x32x1xf32> to vector<32x1xf32>
    %12 = vector.broadcast %11 : vector<32x1xf32> to vector<32x128xf32>
    %13 = arith.addf %9, %12 : vector<32x128xf32>
    %14 = math.tanh %13 : vector<32x128xf32>
    %c1 = arith.constant 1 : index
    %c0_12 = arith.constant 0 : index
    %c0_13 = arith.constant 0 : index
    %15 = vector.load %arg4[%c1, %c0_12, %c0_13] : memref<2x32x32xf32, #tpu.memory_space<vmem>>, vector<1x32x32xf32>
    %16 = vector.shape_cast %15 : vector<1x32x32xf32> to vector<32x32xf32>
    %cst_14 = arith.constant dense<0.000000e+00> : vector<32x128xf32>
    %17 = tpu.matmul %16, %14, %cst_14 {dimension_numbers = #tpu.dot_dimension_numbers<[1], [0], [0], [1], [0, 0, 1, 1], [], []>} : vector<32x32xf32>, vector<32x128xf32>, vector<32x128xf32> -> vector<32x128xf32>
    %c1_15 = arith.constant 1 : index
    %c0_16 = arith.constant 0 : index
    %c0_17 = arith.constant 0 : index
    %18 = vector.load %arg5[%c1_15, %c0_16, %c0_17] : memref<2x32x1xf32, #tpu.memory_space<vmem>>, vector<1x32x1xf32>
    %19 = vector.shape_cast %18 : vector<1x32x1xf32> to vector<32x1xf32>
    %20 = vector.broadcast %19 : vector<32x1xf32> to vector<32x128xf32>
    %21 = arith.addf %17, %20 : vector<32x128xf32>
    %22 = math.tanh %21 : vector<32x128xf32>
    %c0_18 = arith.constant 0 : index
    %c0_19 = arith.constant 0 : index
    %23 = vector.load %arg6[%c0_18, %c0_19] : memref<4x32xf32, #tpu.memory_space<vmem>>, vector<4x32xf32>
    %cst_20 = arith.constant dense<0.000000e+00> : vector<4x128xf32>
    %24 = tpu.matmul %23, %22, %cst_20 {dimension_numbers = #tpu.dot_dimension_numbers<[1], [0], [0], [1], [0, 0, 1, 1], [], []>} : vector<4x32xf32>, vector<32x128xf32>, vector<4x128xf32> -> vector<4x128xf32>
    %c0_21 = arith.constant 0 : index
    %c0_22 = arith.constant 0 : index
    %25 = vector.load %arg7[%c0_21, %c0_22] : memref<4x1xf32, #tpu.memory_space<vmem>>, vector<4x1xf32>
    %26 = vector.broadcast %25 : vector<4x1xf32> to vector<4x128xf32>
    %27 = arith.addf %24, %26 : vector<4x128xf32>
    %c0_23 = arith.constant 0 : index
    %c0_24 = arith.constant 0 : index
    %28 = vector.load %arg8[%c0_23, %c0_24] : memref<4x128xf32, #tpu.memory_space<vmem>>, vector<4x128xf32>
    tpu.vector_store %arg8[%c0_23, %c0_24], %27 {strides = array<i32>} : memref<4x128xf32, #tpu.memory_space<vmem>>, vector<4x128xf32>,
    return
  }
  func.func @transform_0(%arg0: i32) -> (i32, i32) {
    %c0_i32 = arith.constant 0 : i32
    %c0_i32_0 = arith.constant 0 : i32
    return %c0_i32, %arg0 : i32, i32
  }
  func.func @transform_1(%arg0: i32) -> (i32, i32) {
    %c0_i32 = arith.constant 0 : i32
    %c0_i32_0 = arith.constant 0 : i32
    %c0_i32_1 = arith.constant 0 : i32
    return %c0_i32, %c0_i32_0 : i32, i32
  }
  func.func @transform_2(%arg0: i32) -> (i32, i32) {
    %c0_i32 = arith.constant 0 : i32
    %c0_i32_0 = arith.constant 0 : i32
    %c0_i32_1 = arith.constant 0 : i32
    return %c0_i32, %c0_i32_0 : i32, i32
  }
  func.func @transform_3(%arg0: i32) -> (i32, i32, i32) {
    %c0_i32 = arith.constant 0 : i32
    %c0_i32_0 = arith.constant 0 : i32
    %c0_i32_1 = arith.constant 0 : i32
    %c0_i32_2 = arith.constant 0 : i32
    return %c0_i32, %c0_i32_0, %c0_i32_1 : i32, i32, i32
  }
  func.func @transform_4(%arg0: i32) -> (i32, i32, i32) {
    %c0_i32 = arith.constant 0 : i32
    %c0_i32_0 = arith.constant 0 : i32
    %c0_i32_1 = arith.constant 0 : i32
    %c0_i32_2 = arith.constant 0 : i32
    return %c0_i32, %c0_i32_0, %c0_i32_1 : i32, i32, i32
  }
  func.func @transform_5(%arg0: i32) -> (i32, i32) {
    %c0_i32 = arith.constant 0 : i32
    %c0_i32_0 = arith.constant 0 : i32
    %c0_i32_1 = arith.constant 0 : i32
    return %c0_i32, %c0_i32_0 : i32, i32
  }
  func.func @transform_6(%arg0: i32) -> (i32, i32) {
    %c0_i32 = arith.constant 0 : i32
    %c0_i32_0 = arith.constant 0 : i32
    %c0_i32_1 = arith.constant 0 : i32
    return %c0_i32, %c0_i32_0 : i32, i32
  }
  func.func @transform_7(%arg0: i32) -> (i32, i32) {
    %c0_i32 = arith.constant 0 : i32
    %c0_i32_0 = arith.constant 0 : i32
    return %c0_i32, %arg0 : i32, i32
  }
}

</mosaic_0001>

<bundles_post_ra>
// kernel: _bbnn_forward_impl.1
= control target key start
LH: loop header
LB: loop body
LE: loop exit
PB: predicated region body
PF: predicated region fallthrough
CT: control target
= control target key end

     0   :  { %vm68_vm0 = vcmask 1041408   ;;  %vm55_vm1 = vcmask 15360   ;;  %v654_v3 = vmov 0   ;;  %vm189_vm2 = vcmask 261120   ;;  %s795_s0 = inlined_call_operand.vmem [shape: f32[2,128], index: 0, kind: input, shape index: {}]   ;;  %s796_s1 = inlined_call_operand.vmem [shape: f32[32,2], index: 1, kind: input, shape index: {}]   ;;  %s797_s2 = inlined_call_operand.vmem [shape: f32[32,1], index: 2, kind: input, shape index: {}]   ;;  %s798_s4 = inlined_call_operand.vmem [shape: f32[2,32,1], index: 4, kind: input, shape index: {}]   ;;  %s799_s6 = inlined_call_operand.vmem [shape: f32[4,1], index: 6, kind: input, shape index: {}]   ;;  %s800_s3 = inlined_call_operand.vmem [shape: f32[2,32,32], index: 3, kind: input, shape index: {}]   ;;  %s801_s5 = inlined_call_operand.vmem [shape: f32[4,32], index: 5, kind: input, shape index: {}]   ;;  %s802_s7 = inlined_call_operand.vmem [shape: f32[4,128], index: 7, kind: output, shape index: {}]  }
   0x1   :  { %v30_v0 = vld [vmem:[%s795_s0] sm:$0x3]  ;;  %v27_v2 = vld [vmem:[%s796_s1 + $0x8] sm:$0xff]  ;;  %628 = vset.pattern.permute.xlu0 %v654_v3  ;;  %629 = vset.pattern.permute.xlu1 %v654_v3  ;;  %v28_v4 = vld [vmem:[%s796_s1 + $0x10] sm:$0xff]  ;;  %v655_v63 = vmov 0.0|0.0   ;;  %vm656_vm3 = vmmov 0  }
   0x2   :  { %v26_v1 = vld [vmem:[%s796_s1] sm:$0xff]  ;;  %555 = vmatprep.subr.msk.mxu0 %vm68_vm0, %v30_v0  ;;  %v33_v6 = vld [vmem:[%s797_s2 + $0x10] sm:$0xff]  ;;  %v32_v7 = vld [vmem:[%s797_s2 + $0x8] sm:$0xff] }
   0x3   :  { %557 = vmatprep.mubr.msk.f32.mxu0 %vm55_vm1, %v26_v1  ;;  %v31_v5 = vld [vmem:[%s797_s2] sm:$0xff]  ;;  %556 = vmatpush3.msk.msra.mxu0 %vm68_vm0, %v30_v0  ;;  %v29_v8 = vld [vmem:[%s796_s1 + $0x18] sm:$0xff]  ;;  %v166_v11 = vld [vmem:[%s798_s4 + $0x8] sm:$0xff]  ;;  %v657_v0 = vmov 0.0  }
   0x4   :  { %37 = vperm.xlu0 %628, %v31_v5   ;;  %558 = vmatmul.mubr.msk.f32.vlgmr.msra.gmra.mrb[0].mxu0 %vm55_vm1, %v27_v2  ;;  %v34_v9 = vld [vmem:[%s797_s2 + $0x18] sm:$0xff]  ;;  %v165_v10 = vld [vmem:[%s798_s4] sm:$0xff]  ;;  %v167_v12 = vld [vmem:[%s798_s4 + $0x10] sm:$0xff] }
   0x5   :  { %47 = vperm.xlu1 %629, %v33_v6   ;;  %560 = vmatprep.mubr.msk.f32.mxu0 %vm55_vm1, %v28_v4  ;;  %v168_v13 = vld [vmem:[%s798_s4 + $0x18] sm:$0xff]  ;;  %v520_v14 = vld [vmem:[%s798_s4 + $0x20] sm:$0xff]  ;;  %v521_v15 = vld [vmem:[%s798_s4 + $0x28] sm:$0xff] }
   0x6   :  { %v522_v16 = vld [vmem:[%s798_s4 + $0x30] sm:$0xff]  ;;  %v523_v17 = vld [vmem:[%s798_s4 + $0x38] sm:$0xff]  ;;  %v423_v18 = vld [vmem:[%s799_s6] sm:$0xf] }
   0x7   :  { %v161_v19 = vld [vmem:[%s800_s3] sm:$0xff]  ;;  %v162_v38 = vld [vmem:[%s800_s3 + $0x8] sm:$0xff]  ;;  %v163_v39 = vld [vmem:[%s800_s3 + $0x10] sm:$0xff] }
   0x8   :  { %42 = vperm.xlu0 %628, %v32_v7   ;;  %561 = vmatmul.mubr.msk.f32.gmra.mrb[2].mxu0 %vm55_vm1, %v29_v8  ;;  %v164_v40 = vld [vmem:[%s800_s3 + $0x18] sm:$0xff]  ;;  %v516_v41 = vld [vmem:[%s800_s3 + $0x20] sm:$0xff]  ;;  %v517_v60 = vld [vmem:[%s800_s3 + $0x28] sm:$0xff] }
   0x9   :  { %52 = vperm.xlu1 %629, %v34_v9   ;;  %571 = vmatprep.mubr.msk.f32.mxu1 %vm189_vm2, %v161_v19  ;;  %v518_v61 = vld [vmem:[%s800_s3 + $0x30] sm:$0xff]  ;;  %v519_v62 = vld [vmem:[%s800_s3 + $0x38] sm:$0xff]  ;;  %v422_v19 = vld [vmem:[%s801_s5] sm:$0xf] }
   0xa   :  { %585 = vmatprep.mubr.msk.f32.mxu0 %vm189_vm2, %v516_v41 }
   0xc   :  { %171 = vperm.xlu0 %628, %v165_v10  }
   0xd   :  { %176 = vperm.xlu1 %629, %v166_v11  }
  0x10   :  { %181 = vperm.xlu0 %628, %v167_v12  }
  0x11   :  { %186 = vperm.xlu1 %629, %v168_v13  }
  0x14   :  { %303 = vperm.xlu0 %628, %v520_v14  }
  0x15   :  { %308 = vperm.xlu1 %629, %v521_v15  }
  0x18   :  { %313 = vperm.xlu0 %628, %v522_v16  }
  0x19   :  { %318 = vperm.xlu1 %629, %v523_v17  }
  0x1c   :  { %426 = vperm.xlu0 %628, %v423_v18  }
  0x83   :  { %v38_v20 = vpop.permute.xlu0 %37 }
  0x84   :  { %v48_v21 = vpop.permute.xlu1 %47 }
  0x87   :  { %v43_v22 = vpop.permute.xlu0 %42 }
  0x88   :  { %v53_v27 = vpop.permute.xlu1 %52 }
  0x8b   :  { %v172_v43 = vpop.permute.xlu0 %171 }
  0x8c   :  { %v177_v42 = vpop.permute.xlu1 %176 }
  0x8f   :  { %v182_v50 = vpop.permute.xlu0 %181 }
  0x90   :  { %v187_v48 = vpop.permute.xlu1 %186 }
  0x93   :  { %v304_v2 = vpop.permute.xlu0 %303 }
  0x94   :  { %v309_v1 = vpop.permute.xlu1 %308 }
  0x97   :  { %v314_v9 = vpop.permute.xlu0 %313 }
  0x98   :  { %v319_v7 = vpop.permute.xlu1 %318 }
  0xd7   :  { %v559_v23 = vpop.f32.mrb[0].mxu0 }
  0xd8   :  { %v144_v24 = vadd.f32 %v559_v23, %v43_v22  ;;  %v138_v25 = vpop.f32.mrb[1].mxu0 }
  0xd9   :  { %v139_v26 = vadd.f32 %v138_v25, %v38_v20  ;;  %v427_v20 = vpop.permute.xlu0 %426 }
  0xda   :  { %630 = vtanh.f32 %v144_v24 }
  0xdb   :  { %632 = vtanh.f32 %v139_v26  ;;  %v562_v28 = vpop.f32.mrb[2].mxu0 }
  0xdc   :  { %v154_v29 = vadd.f32 %v562_v28, %v53_v27  ;;  %v148_v30 = vpop.f32.mrb[3].mxu0 }
  0xdd   :  { %v149_v31 = vadd.f32 %v148_v30, %v48_v21 }
  0xde   :  { %634 = vtanh.f32 %v154_v29 }
  0xdf   :  { %636 = vtanh.f32 %v149_v31 }
  0xe4   :  { %v631_v32 = vpop.eup %630 }
  0xe5   :  { %v633_v33 = vpop.eup %632 }
  0xe6   :  { %v602_v34 = vpack.c.bf16 %v631_v32, %v633_v33 }
  0xe8   :  { %v635_v35 = vpop.eup %634  ;;  %603 = vmatprep.subr.bf16.mxu1 %v602_v34 }
  0xe9   :  { %v637_v36 = vpop.eup %636  ;;  %605 = vmatpush3.bf16.msra.mxu1 %v602_v34 }
  0xea   :  { %v606_v37 = vpack.c.bf16 %v635_v35, %v637_v36 }
  0xec   :  { %607 = vmatprep.subr.bf16.mxu1 %v606_v37 }
  0xed   :  { %609 = vmatpush3.bf16.msra.mxu1 %v606_v37 }
  0xee   :  { %618 = vmatprep.subr.bf16.mxu1 %v655_v63 }
  0xf0   :  { %572 = vmatmul.mubr.msk.f32.vlgmr.msra.gmra.mrb[0].mxu1 %vm189_vm2, %v162_v38 }
  0xf1   :  { %574 = vmatprep.mubr.msk.f32.mxu1 %vm189_vm2, %v163_v39 }
  0xf4   :  { %575 = vmatmul.mubr.msk.f32.gmra.mrb[2].mxu1 %vm189_vm2, %v164_v40 }
  0xf5   :  { %599 = vmatprep.mubr.msk.f32.mxu1 %vm656_vm3, %v657_v0 }
 0x1c3   :  { %v573_v44 = vpop.f32.mrb[0].mxu1 }
 0x1c4   :  { %v274_v45 = vadd.f32 %v573_v44, %v177_v42  ;;  %v268_v46 = vpop.f32.mrb[1].mxu1 }
 0x1c5   :  { %v269_v47 = vadd.f32 %v268_v46, %v172_v43 }
 0x1c6   :  { %638 = vtanh.f32 %v274_v45 }
 0x1c7   :  { %640 = vtanh.f32 %v269_v47  ;;  %v576_v49 = vpop.f32.mrb[2].mxu1 }
 0x1c8   :  { %v284_v51 = vadd.f32 %v576_v49, %v187_v48  ;;  %v278_v52 = vpop.f32.mrb[3].mxu1 }
 0x1c9   :  { %v279_v53 = vadd.f32 %v278_v52, %v182_v50 }
 0x1ca   :  { %642 = vtanh.f32 %v284_v51 }
 0x1cb   :  { %644 = vtanh.f32 %v279_v53 }
 0x1d0   :  { %v639_v54 = vpop.eup %638 }
 0x1d1   :  { %v641_v55 = vpop.eup %640 }
 0x1d2   :  { %v610_v56 = vpack.c.bf16 %v639_v54, %v641_v55 }
 0x1d4   :  { %v643_v57 = vpop.eup %642  ;;  %611 = vmatprep.subr.bf16.mxu0 %v610_v56 }
 0x1d5   :  { %v645_v58 = vpop.eup %644  ;;  %613 = vmatpush3.bf16.msra.mxu0 %v610_v56 }
 0x1d6   :  { %v614_v59 = vpack.c.bf16 %v643_v57, %v645_v58 }
 0x1d8   :  { %615 = vmatprep.subr.bf16.mxu0 %v614_v59 }
 0x1d9   :  { %617 = vmatpush3.bf16.msra.mxu0 %v614_v59 }
 0x1dc   :  { %586 = vmatmul.mubr.msk.f32.vlgmr.msra.gmra.mrb[4].mxu0 %vm189_vm2, %v517_v60 }
 0x1dd   :  { %588 = vmatprep.mubr.msk.f32.mxu0 %vm189_vm2, %v518_v61 }
 0x1e0   :  { %589 = vmatmul.mubr.msk.f32.gmra.mrb[6].mxu0 %vm189_vm2, %v519_v62 }
 0x2af   :  { %v587_v3 = vpop.f32.mrb[4].mxu0 }
 0x2b0   :  { %v405_v4 = vadd.f32 %v587_v3, %v309_v1  ;;  %v399_v5 = vpop.f32.mrb[5].mxu0 }
 0x2b1   :  { %v400_v6 = vadd.f32 %v399_v5, %v304_v2 }
 0x2b2   :  { %646 = vtanh.f32 %v405_v4 }
 0x2b3   :  { %648 = vtanh.f32 %v400_v6  ;;  %v590_v8 = vpop.f32.mrb[6].mxu0 }
 0x2b4   :  { %v415_v10 = vadd.f32 %v590_v8, %v319_v7  ;;  %v409_v11 = vpop.f32.mrb[7].mxu0 }
 0x2b5   :  { %v410_v12 = vadd.f32 %v409_v11, %v314_v9 }
 0x2b6   :  { %650 = vtanh.f32 %v415_v10 }
 0x2b7   :  { %652 = vtanh.f32 %v410_v12 }
 0x2bc   :  { %v647_v13 = vpop.eup %646 }
 0x2bd   :  { %v649_v14 = vpop.eup %648 }
 0x2be   :  { %v619_v15 = vpack.c.bf16 %v647_v13, %v649_v14 }
 0x2c0   :  { %v651_v16 = vpop.eup %650  ;;  %620 = vmatpush3.bf16.msra.mxu1 %v619_v15 }
 0x2c1   :  { %v653_v17 = vpop.eup %652  ;;  %621 = vmatprep.subr.bf16.mxu1 %v655_v63 }
 0x2c2   :  { %v622_v18 = vpack.c.bf16 %v651_v16, %v653_v17 }
 0x2c4   :  { %623 = vmatpush3.bf16.msra.mxu1 %v622_v18 }
 0x2c7   :  { %600 = vmatmul.mubr.msk.f32.vlgmr.msra.gmra.mrb[4].mxu1 %vm189_vm2, %v422_v19 }
 0x39a   :  { %v498_v21 = vpop.f32.mrb[4].mxu1 }
 0x39b   :  { %v499_v22 = vadd.f32 %v498_v21, %v427_v20  ;;  %v601_v23 = vpop.f32.mrb[5].mxu1 }
 0x39d   :  { %502 = vst [vmem:[%s802_s7] sm:$0xf] %v499_v22 }

</bundles_post_ra>
